<compile_context>
chip_gen: v7x
topology: tpu7x:2x2x1
jax: 0.10.0
libtpu: 0.0.40
codegen_flags: <defaults>
</compile_context>

<pallas_src>
import functools
from typing import NamedTuple

import jax
import jax.numpy as jnp
from jax import lax
from jax.experimental import pallas as pl
from jax.experimental.pallas import tpu as pltpu

BN_EPS = 1e-5
LEAKY_SLOPE = 0.01  # PyTorch nn.LeakyReLU default

VMEM_CAP = 48 * 2**20          # stay well under v7x's 64 MiB per TensorCore
VMEM_TILE_BUDGET = 40 * 2**20  # budget for resident tiles (double-buffered)


def _round_up(x, m):
    return ((x + m - 1) // m) * m


def _pick_tile(dim128, cap):
    """Largest multiple of 128 that divides `dim128` (itself a multiple of
    128) and is <= cap. Guarantees zero over-padding from tile rounding."""
    units = dim128 // 128
    best = 128
    for m in range(1, units + 1):
        t = 128 * m
        if t > cap:
            break
        if units % m == 0:
            best = t
    return best


class UpBlockParams(NamedTuple):
    weight_t: jax.Array    # (k_pad, n_pad), compute dtype, pre-transposed
    gamma_beta: jax.Array  # (2, n_pad), float32 (row 0 = gamma, row 1 = beta)
    in_dim: int
    out_dim: int


def prepare_up_block_params(weight, bias, gamma, beta, *,
                            compute_dtype=jnp.bfloat16):
    """One-time parameter prep (call at init, NOT per forward):
      * transpose weight to (in_dim, out_dim) -> plain NN MXU contraction,
      * pad lane dims to multiples of 128,
      * cast the matmul operand to `compute_dtype` (bf16: 2-4x MXU throughput
        and half the weight HBM traffic on every TPU generation),
      * stack gamma/beta into one (2, n_pad) array (single DMA stream).
    The Linear bias is dropped: BatchNorm subtracts the batch mean, so a
    per-feature constant added before BN is a mathematical no-op.
    """
    del bias  # cancels exactly under BatchNorm (training-mode batch stats)
    out_dim, in_dim = weight.shape
    k_pad = _round_up(in_dim, 128)
    n_pad = _round_up(out_dim, 128)

    w_t = jnp.zeros((k_pad, n_pad), dtype=compute_dtype)
    w_t = w_t.at[:in_dim, :out_dim].set(weight.T.astype(compute_dtype))

    gb = jnp.zeros((2, n_pad), dtype=jnp.float32)
    gb = gb.at[0, :out_dim].set(gamma.astype(jnp.float32))
    gb = gb.at[1, :out_dim].set(beta.astype(jnp.float32))
    return UpBlockParams(w_t, gb, in_dim, out_dim)


def _epilogue(y, gb_ref, o_ref, batch):
    """BatchNorm1d (training-mode, biased variance) over the TRUE batch,
    then LeakyReLU. Zero-padded batch rows contribute exactly 0 to both the
    sum and the sum-of-squares (no bias was added), so no mask is needed as
    long as we divide by the true batch size."""
    inv_b = jnp.float32(1.0 / batch)
    s = jnp.sum(y, axis=0, keepdims=True)
    ss = jnp.sum(y * y, axis=0, keepdims=True)
    mean = s * inv_b
    var = jnp.maximum(ss * inv_b - mean * mean, 0.0)

    gamma = gb_ref[0:1, :]
    beta = gb_ref[1:2, :]
    y_bn = (y - mean) * lax.rsqrt(var + BN_EPS) * gamma + beta
    out = jnp.where(y_bn > 0, y_bn, LEAKY_SLOPE * y_bn)
    o_ref[...] = out.astype(o_ref.dtype)


def _up_block_kernel_single_k(x_ref, w_ref, gb_ref, o_ref, *, batch):
    # Whole K in one tile: no accumulator VMEM round-trip; the MXU result
    # flows straight into the BN/LeakyReLU epilogue.
    y = jnp.dot(x_ref[...], w_ref[...], preferred_element_type=jnp.float32)
    _epilogue(y, gb_ref, o_ref, batch)


def _up_block_kernel_multi_k(x_ref, w_ref, gb_ref, o_ref, acc_ref, *, batch):
    k = pl.program_id(1)
    part = jnp.dot(x_ref[...], w_ref[...], preferred_element_type=jnp.float32)

    @pl.when(k == 0)
    def _():
        acc_ref[...] = part          # overwrite: no separate zero-init pass

    @pl.when(k > 0)
    def _():
        acc_ref[...] += part

    @pl.when(k == pl.num_programs(1) - 1)
    def _():
        _epilogue(acc_ref[...], gb_ref, o_ref, batch)


def vanilla_up_block(x, params: UpBlockParams, *, tn_cap=512, tk_cap=512,
                     out_dtype=None):
    """x: (B, in_dim) any float dtype; params from prepare_up_block_params."""
    B, in_dim = x.shape
    assert in_dim == params.in_dim
    out_dim = params.out_dim
    w_t, gb = params.weight_t, params.gamma_beta
    k_pad, n_pad = w_t.shape
    compute_dtype = w_t.dtype
    in_itemsize = jnp.dtype(compute_dtype).itemsize
    out_dtype = out_dtype or x.dtype
    out_itemsize = jnp.dtype(out_dtype).itemsize

    # Sub-32-bit dtypes pack 4//itemsize rows per sublane -> align the batch
    # to the packed-sublane height (16 for bf16, 8 for f32).
    row_align = 8 * max(1, 4 // in_itemsize)
    b_pad = _round_up(B, row_align)
    # TODO(synk): batch is kept whole per tile (BN needs full-batch stats);
    # very large B on v7x (64 MiB VMEM) would need batch tiling with
    # cross-tile sum/ssq accumulation + a second normalization pass.

    # N tile: zero over-padding; keep >=2 tiles on the 'parallel' axis when
    # out_dim allows so v7x's second TensorCore gets work.
    eff_tn_cap = tn_cap
    if n_pad >= 256:
        eff_tn_cap = min(eff_tn_cap, max(128, (n_pad // 2) // 128 * 128))
    tn = _pick_tile(n_pad, eff_tn_cap)

    def tile_bytes(tk_try, with_acc):
        return (2 * b_pad * tk_try * in_itemsize        # x (double-buffered)
                + 2 * tk_try * tn * in_itemsize         # weight (double-buffered)
                + 2 * b_pad * tn * out_itemsize         # output (double-buffered)
                + (b_pad * tn * 4 if with_acc else 0)   # f32 accumulator
                + 2 * 2 * n_pad * 4)                    # gamma/beta

    # K tile: collapse the reduction axis entirely when it fits the VMEM
    # budget (x stays resident across all output tiles, no accumulator RMW);
    # otherwise tile K with zero over-padding.
    if tile_bytes(k_pad, with_acc=False) <= VMEM_TILE_BUDGET:
        tk = k_pad
    else:
        tk = _pick_tile(k_pad, tk_cap)
        while tk > 128 and tile_bytes(tk, with_acc=True) > VMEM_TILE_BUDGET:
            tk = _pick_tile(k_pad, tk - 128)
    single_k = (tk == k_pad)

    # Per-call work on x only: cast to the compute dtype and zero-pad.
    if (b_pad, k_pad) != (B, in_dim) or x.dtype != compute_dtype:
        xp = jnp.zeros((b_pad, k_pad), dtype=compute_dtype)
        xp = xp.at[:B, :in_dim].set(x.astype(compute_dtype))
    else:
        xp = x

    grid = (n_pad // tn, k_pad // tk)
    vmem_limit = int(min(VMEM_CAP,
                         max(2 * tile_bytes(tk, not single_k), 16 * 2**20)))

    if single_k:
        kernel = functools.partial(_up_block_kernel_single_k, batch=B)
        scratch = []
    else:
        kernel = functools.partial(_up_block_kernel_multi_k, batch=B)
        scratch = [pltpu.VMEM((b_pad, tn), jnp.float32)]

    out = pl.pallas_call(
        kernel,
        out_shape=jax.ShapeDtypeStruct((b_pad, n_pad), out_dtype),
        grid_spec=pltpu.PrefetchScalarGridSpec(
            num_scalar_prefetch=0,
            grid=grid,
            in_specs=[
                pl.BlockSpec((b_pad, tk), lambda j, k: (0, k)),   # x
                pl.BlockSpec((tk, tn), lambda j, k: (k, j)),      # weight (K,N)
                pl.BlockSpec((2, tn), lambda j, k: (0, j)),       # gamma/beta
            ],
            out_specs=pl.BlockSpec((b_pad, tn), lambda j, k: (0, j)),
            scratch_shapes=scratch,
        ),
        compiler_params=pltpu.CompilerParams(
            dimension_semantics=("parallel", "arbitrary"),
            vmem_limit_bytes=vmem_limit,
        ),
    )(xp, w_t, gb)

    return out[:B, :out_dim]


def reference(x, weight, bias, gamma, beta, compute_dtype):
    """Pure-JAX reference at the same operand precision as the kernel
    (operands cast to compute_dtype, f32 accumulation). Linear bias included
    — it cancels under BN, so it matches the bias-free kernel."""
    xq = x.astype(compute_dtype).astype(jnp.float32)
    wq = weight.astype(compute_dtype).astype(jnp.float32)
    y = xq @ wq.T + bias
    mean = jnp.mean(y, axis=0, keepdims=True)
    var = jnp.mean((y - mean) ** 2, axis=0, keepdims=True)
    y = (y - mean) / jnp.sqrt(var + BN_EPS) * gamma + beta
    return jnp.where(y > 0, y, LEAKY_SLOPE * y)


if __name__ == "__main__":
    B, in_dim, out_dim = 8, 32, 64
    compute_dtype = jnp.bfloat16  # MXU operand dtype; accumulation stays f32

    key = jax.random.PRNGKey(0)
    kx, kw, kb, kg, kbe = jax.random.split(key, 5)

    # Deterministic synthetic parameters (shapes from nn.Linear / nn.BatchNorm1d).
    # TODO(synk): the original `init(self)` helper is not defined in the snippet;
    # using deterministic random init instead of its (unknown) scheme.
    x = jax.random.normal(kx, (B, in_dim), dtype=jnp.float32)
    weight = jax.random.normal(kw, (out_dim, in_dim), dtype=jnp.float32) * 0.1
    bias = jax.random.normal(kb, (out_dim,), dtype=jnp.float32) * 0.1
    gamma = 1.0 + 0.1 * jax.random.normal(kg, (out_dim,), dtype=jnp.float32)
    beta = 0.1 * jax.random.normal(kbe, (out_dim,), dtype=jnp.float32)

    # One-time parameter prep (pad / transpose / cast / stack).
    params = prepare_up_block_params(weight, bias, gamma, beta,
                                     compute_dtype=compute_dtype)

    out = vanilla_up_block(x, params)
    out = jax.block_until_ready(out)

    ref = reference(x, weight, bias, gamma, beta, compute_dtype)
    assert out.shape == (B, out_dim)
    assert jnp.allclose(out, ref, atol=1e-3, rtol=1e-3), "mismatch vs reference"

    print("KERNEL_OK")
</pallas_src>

<mosaic_0001>
module attributes {stable_mosaic.version = 11 : i64} {
  func.func @_up_block_kernel_single_k(%arg0: i32, %arg1: i32, %arg2: memref<16x128xbf16, #tpu.memory_space<vmem>>, %arg3: memref<128x128xbf16, #tpu.memory_space<vmem>>, %arg4: memref<2x128xf32, #tpu.memory_space<vmem>>, %arg5: memref<16x128xf32, #tpu.memory_space<vmem>>) attributes {dimension_semantics = [#tpu.dimension_semantics<parallel>, #tpu.dimension_semantics<arbitrary>], iteration_bounds = array<i64: 1, 1>, scalar_prefetch = 0 : i64, scratch_operands = 0 : i64, tpu.core_type = #tpu.core_type<tc>, window_params = [{transform_indices = @transform_0, window_bounds = array<i64: 16, 128>}, {transform_indices = @transform_1, window_bounds = array<i64: 128, 128>}, {transform_indices = @transform_2, window_bounds = array<i64: 2, 128>}, {transform_indices = @transform_3, window_bounds = array<i64: 16, 128>}]} {
    %c0 = arith.constant 0 : index
    %c0_0 = arith.constant 0 : index
    %0 = vector.load %arg2[%c0, %c0_0] : memref<16x128xbf16, #tpu.memory_space<vmem>>, vector<16x128xbf16>
    %c0_1 = arith.constant 0 : index
    %c0_2 = arith.constant 0 : index
    %1 = vector.load %arg3[%c0_1, %c0_2] : memref<128x128xbf16, #tpu.memory_space<vmem>>, vector<128x128xbf16>
    %cst = arith.constant dense<0.000000e+00> : vector<16x128xf32>
    %2 = tpu.matmul %0, %1, %cst {dimension_numbers = #tpu.dot_dimension_numbers<[1], [0], [0], [1], [0, 0, 1, 1], [], []>} : vector<16x128xbf16>, vector<128x128xbf16>, vector<16x128xf32> -> vector<16x128xf32>
    %cst_3 = arith.constant dense<0.000000e+00> : vector<128xf32>
    %3 = vector.multi_reduction <add>, %2, %cst_3 [0] : vector<16x128xf32> to vector<128xf32>
    %4 = vector.shape_cast %3 : vector<128xf32> to vector<1x128xf32>
    %5 = arith.mulf %2, %2 : vector<16x128xf32>
    %cst_4 = arith.constant dense<0.000000e+00> : vector<128xf32>
    %6 = vector.multi_reduction <add>, %5, %cst_4 [0] : vector<16x128xf32> to vector<128xf32>
    %7 = vector.shape_cast %6 : vector<128xf32> to vector<1x128xf32>
    %cst_5 = arith.constant 1.250000e-01 : f32
    %8 = vector.broadcast %cst_5 : f32 to vector<1x128xf32>
    %9 = arith.mulf %4, %8 : vector<1x128xf32>
    %cst_6 = arith.constant 1.250000e-01 : f32
    %10 = vector.broadcast %cst_6 : f32 to vector<1x128xf32>
    %11 = arith.mulf %7, %10 : vector<1x128xf32>
    %12 = arith.mulf %9, %9 : vector<1x128xf32>
    %13 = arith.subf %11, %12 : vector<1x128xf32>
    %cst_7 = arith.constant 0.000000e+00 : f32
    %14 = vector.broadcast %cst_7 : f32 to vector<1x128xf32>
    %15 = arith.maximumf %13, %14 : vector<1x128xf32>
    %c0_8 = arith.constant 0 : index
    %c0_9 = arith.constant 0 : index
    %16 = vector.load %arg4[%c0_8, %c0_9] : memref<2x128xf32, #tpu.memory_space<vmem>>, vector<1x128xf32>
    %c1 = arith.constant 1 : index
    %c0_10 = arith.constant 0 : index
    %17 = vector.load %arg4[%c1, %c0_10] : memref<2x128xf32, #tpu.memory_space<vmem>>, vector<1x128xf32>
    %18 = vector.broadcast %9 : vector<1x128xf32> to vector<16x128xf32>
    %19 = arith.subf %2, %18 : vector<16x128xf32>
    %cst_11 = arith.constant 9.99999974E-6 : f32
    %20 = vector.broadcast %cst_11 : f32 to vector<1x128xf32>
    %21 = arith.addf %15, %20 : vector<1x128xf32>
    %22 = math.rsqrt %21 : vector<1x128xf32>
    %23 = vector.broadcast %22 : vector<1x128xf32> to vector<16x128xf32>
    %24 = arith.mulf %19, %23 : vector<16x128xf32>
    %25 = vector.broadcast %16 : vector<1x128xf32> to vector<16x128xf32>
    %26 = arith.mulf %24, %25 : vector<16x128xf32>
    %27 = vector.broadcast %17 : vector<1x128xf32> to vector<16x128xf32>
    %28 = arith.addf %26, %27 : vector<16x128xf32>
    %cst_12 = arith.constant 0.000000e+00 : f32
    %29 = vector.broadcast %cst_12 : f32 to vector<16x128xf32>
    %30 = arith.cmpf ogt, %28, %29 : vector<16x128xf32>
    %cst_13 = arith.constant 0.00999999977 : f32
    %31 = vector.broadcast %cst_13 : f32 to vector<16x128xf32>
    %32 = arith.mulf %31, %28 : vector<16x128xf32>
    %33 = arith.select %30, %28, %32 : vector<16x128xi1>, vector<16x128xf32>
    %c0_14 = arith.constant 0 : index
    %c0_15 = arith.constant 0 : index
    %34 = vector.load %arg5[%c0_14, %c0_15] : memref<16x128xf32, #tpu.memory_space<vmem>>, vector<16x128xf32>
    tpu.vector_store %arg5[%c0_14, %c0_15], %33 {strides = array<i32>} : memref<16x128xf32, #tpu.memory_space<vmem>>, vector<16x128xf32>,
    return
  }
  func.func @transform_0(%arg0: i32, %arg1: i32) -> (i32, i32) {
    %c0_i32 = arith.constant 0 : i32
    %c0_i32_0 = arith.constant 0 : i32
    return %c0_i32, %arg1 : i32, i32
  }
  func.func @transform_1(%arg0: i32, %arg1: i32) -> (i32, i32) {
    %c0_i32 = arith.constant 0 : i32
    return %arg1, %arg0 : i32, i32
  }
  func.func @transform_2(%arg0: i32, %arg1: i32) -> (i32, i32) {
    %c0_i32 = arith.constant 0 : i32
    %c0_i32_0 = arith.constant 0 : i32
    return %c0_i32, %arg0 : i32, i32
  }
  func.func @transform_3(%arg0: i32, %arg1: i32) -> (i32, i32) {
    %c0_i32 = arith.constant 0 : i32
    %c0_i32_0 = arith.constant 0 : i32
    return %c0_i32, %arg0 : i32, i32
  }
}

</mosaic_0001>

<bundles_post_ra>
// kernel: tpu_custom_call.1
= control target key start
LH: loop header
LB: loop body
LE: loop exit
PB: predicated region body
PF: predicated region fallthrough
CT: control target
= control target key end

     0   :  { %8 = vsyncpa [#allocation3], 0  ;;  %s427_s0 = inlined_call_operand.hbm [shape: bf16[16,128], index: 0, kind: input, shape index: {}]   ;;  %s428_s1 = inlined_call_operand.hbm [shape: bf16[128,128], index: 1, kind: input, shape index: {}]   ;;  %s429_s2 = inlined_call_operand.vmem [shape: f32[2,128], index: 2, kind: input, shape index: {}]   ;;  %s430_s3 = inlined_call_operand.hbm [shape: f32[16,128], index: 3, kind: output, shape index: {}]  }
   0x1   :  { %9 = vsyncpa [#allocation6], 0 }
   0x2   :  { %10 = vsyncpa [#allocation4], 0  ;;  %s356_s12 = smov [#allocation2]   ;;  %s284_s16 = scalar_lea.hbm %s427_s0, 128 }
   0x3   :  { %s16_s13 = sshll.u32 %s356_s12, 4  ;;  %p285_p0 = scmp.ne.s32.totalorder %s427_s0, %s284_s16  ;;  %s17_s13 = int_to_ptr.vmem [resolvable:$true] %s16_s13 }
   0x4   :  { %p288_p1 = scmp.lt.u32.totalorder %s284_s16, %s427_s0 }
   0x6   :  { %p290_p2 = pnand %p288_p1, %p285_p0 }
   0x8   :  { %293 = shalt.err (!%p290_p2)
}
   0x9   :  { %s294_s21 = scalar_lea.vmem %s17_s13, 128  ;;  %p299_p4 = scmp.lt.s32.totalorder %s17_s13, %s17_s13 }
   0xa   :  { %p295_p3 = scmp.ne.s32.totalorder %s17_s13, %s294_s21  ;;  %p300_p5 = scmp.lt.s32.totalorder %s294_s21, %s294_s21 }
   0xc   :  { %p301_p6 = por %p300_p5, %p299_p4 }
   0xe   :  { %p302_p7 = pnand %p301_p6, %p295_p3 }
  0x10   :  { %305 = shalt.err (!%p302_p7)
}
  0x11   :  { %s357_s22 = smov 64   ;;  %s358_s23 = smov 4  }
  0x12   :  { %22 = dma.hbm_to_vmem [thread:$0]  %s427_s0, 128, %s17_s13, [#allocation3], %s357_s22, %s357_s22, %s358_s23  }
  0x13   :  { %s359_s26 = smov [#allocation5]   ;;  %s306_s30 = scalar_lea.hbm %s428_s1, 1024 }
  0x14   :  { %s28_s27 = sshll.u32 %s359_s26, 4  ;;  %p307_p8 = scmp.ne.s32.totalorder %s428_s1, %s306_s30  ;;  %s29_s27 = int_to_ptr.vmem [resolvable:$true] %s28_s27 }
  0x15   :  { %p310_p9 = scmp.lt.u32.totalorder %s306_s30, %s428_s1 }
  0x17   :  { %p312_p10 = pnand %p310_p9, %p307_p8 }
  0x19   :  { %315 = shalt.err (!%p312_p10)
}
  0x1a   :  { %s316_s8 = scalar_lea.vmem %s29_s27, 1024  ;;  %p321_p12 = scmp.lt.s32.totalorder %s29_s27, %s29_s27 }
  0x1b   :  { %p317_p11 = scmp.ne.s32.totalorder %s29_s27, %s316_s8  ;;  %p322_p13 = scmp.lt.s32.totalorder %s316_s8, %s316_s8 }
  0x1d   :  { %p323_p0 = por %p322_p13, %p321_p12 }
  0x1f   :  { %p324_p1 = pnand %p323_p0, %p317_p11 }
  0x21   :  { %327 = shalt.err (!%p324_p1)
}
  0x22   :  { %34 = dma.hbm_to_vmem [thread:$0]  %s428_s1, 1024, %s29_s27, [#allocation6], %s357_s22, %s357_s22, %s358_s23  }
  0x23   :  { %350 = dma.done.wait [#allocation3], 128  }
  0x24   :  { %351 = vsyncadd [#allocation3], 4294967168 }
  0x25   :  { %352 = dma.done.wait [#allocation6], 1024  }
  0x26   :  { %353 = vsyncadd [#allocation6], 4294966272  ;;  %v360_v0 = vmov 0.0   ;;  %vm361_vm0 = vmmov 0   ;;  %v273_v1 = vld [vmem:[#allocation5] sm:$0xff]   ;;  %v274_v2 = vld [vmem:[#allocation5 + $0x8] sm:$0xff]  }
  0x27   :  { %244 = vmatprep.subr.bf16.mxu0 %v360_v0  ;;  %260 = vmatprep.mubr.msk.bf16.mxu0 %vm361_vm0, %v360_v0  ;;  %v275_v3 = vld [vmem:[#allocation5 + $0x10] sm:$0xff]   ;;  %v276_v4 = vld [vmem:[#allocation5 + $0x18] sm:$0xff]   ;;  %v277_v5 = vld [vmem:[#allocation5 + $0x20] sm:$0xff]   ;;  %s362_s13 = smov [#allocation7]  }
  0x28   :  { %245 = vmatpush3.bf16.msra.mxu0 %v273_v1  ;;  %v278_v6 = vld [vmem:[#allocation5 + $0x28] sm:$0xff]   ;;  %v279_v7 = vld [vmem:[#allocation5 + $0x30] sm:$0xff]   ;;  %v280_v8 = vld [vmem:[#allocation5 + $0x38] sm:$0xff]   ;;  %s211_s14 = sshll.u32 %s362_s13, 4  ;;  %s212_s14 = int_to_ptr.vmem [resolvable:$true] %s211_s14 }
  0x29   :  { %246 = vmatprep.subr.bf16.mxu0 %v360_v0  ;;  %v281_v9 = vld [vmem:[#allocation2] sm:$0xff]   ;;  %s328_s15 = scalar_lea.vmem %s212_s14, 256  ;;  %p333_p3 = scmp.lt.s32.totalorder %s212_s14, %s212_s14 }
  0x2a   :  { %v233_v39 = vld [vmem:[%s429_s2] ss:$0 sm:$0xff]  ;;  %v234_v42 = vld [vmem:[%s429_s2 + $0x1] ss:$0 sm:$0xff]  ;;  %p329_p2 = scmp.ne.s32.totalorder %s212_s14, %s328_s15  ;;  %p334_p4 = scmp.lt.s32.totalorder %s328_s15, %s328_s15 }
  0x2c   :  { %247 = vmatpush3.bf16.msra.mxu0 %v274_v2  ;;  %p335_p5 = por %p334_p4, %p333_p3 }
  0x2d   :  { %248 = vmatprep.subr.bf16.mxu0 %v360_v0 }
  0x2e   :  { %p336_p6 = pnand %p335_p5, %p329_p2 }
  0x30   :  { %249 = vmatpush3.bf16.msra.mxu0 %v275_v3 }
  0x31   :  { %250 = vmatprep.subr.bf16.mxu0 %v360_v0 }
  0x34   :  { %251 = vmatpush3.bf16.msra.mxu0 %v276_v4 }
  0x35   :  { %252 = vmatprep.subr.bf16.mxu0 %v360_v0 }
  0x38   :  { %253 = vmatpush3.bf16.msra.mxu0 %v277_v5 }
  0x39   :  { %254 = vmatprep.subr.bf16.mxu0 %v360_v0 }
  0x3c   :  { %255 = vmatpush3.bf16.msra.mxu0 %v278_v6 }
  0x3d   :  { %256 = vmatprep.subr.bf16.mxu0 %v360_v0 }
  0x40   :  { %257 = vmatpush3.bf16.msra.mxu0 %v279_v7 }
  0x41   :  { %258 = vmatprep.subr.bf16.mxu0 %v360_v0 }
  0x44   :  { %259 = vmatpush3.bf16.msra.mxu0 %v280_v8 }
  0x47   :  { %261 = vmatmul.mubr.bf16.vlgmr.msra.gmra.mrb[0].mxu0 %v281_v9 }
 0x11a   :  { %v150_v10 = vpop.f32.mrb[0].mxu0 }
 0x11b   :  { %v262_v11 = vpop.f32.mrb[1].mxu0  ;;  %v164_v13 = vmul.f32 %v150_v10, %v150_v10 }
 0x11c   :  { %v153_v12 = vpop.f32.mrb[2].mxu0 }
 0x11d   :  { %v157_v14 = vadd.f32 %v153_v12, %v150_v10  ;;  %v165_v15 = vmul.f32 %v153_v12, %v153_v12  ;;  %v263_v16 = vpop.f32.mrb[3].mxu0 }
 0x11f   :  { %v158_v17 = vrot.slane %v157_v14, 4  ;;  %v166_v18 = vadd.f32 %v165_v15, %v164_v13 }
 0x121   :  { %v159_v19 = vadd.f32 %v158_v17, %v157_v14  ;;  %v167_v20 = vrot.slane %v166_v18, 4 }
 0x123   :  { %v160_v21 = vrot.slane %v159_v19, 2  ;;  %v168_v22 = vadd.f32 %v167_v20, %v166_v18 }
 0x125   :  { %v161_v23 = vadd.f32 %v160_v21, %v159_v19  ;;  %v169_v24 = vrot.slane %v168_v22, 2 }
 0x127   :  { %v162_v25 = vrot.slane %v161_v23, 1  ;;  %v170_v26 = vadd.f32 %v169_v24, %v168_v22 }
 0x129   :  { %v163_v27 = vadd.f32 %v162_v25, %v161_v23  ;;  %v171_v28 = vrot.slane %v170_v26, 1 }
 0x12b   :  { %v172_v29 = vadd.f32 %v171_v28, %v170_v26  ;;  %v173_v30 = vmul.f32 0.125, %v163_v27 }
 0x12d   :  { %v174_v31 = vmul.f32 0.125, %v172_v29  ;;  %v175_v32 = vmul.f32 %v173_v30, %v173_v30  ;;  %v180_v33 = vsub.f32 %v150_v10, %v173_v30  ;;  %v181_v34 = vsub.f32 %v153_v12, %v173_v30 }
 0x12f   :  { %v176_v35 = vsub.f32 %v174_v31, %v175_v32 }
 0x131   :  { %v177_v36 = vmax.f32 %v176_v35, 0.0 }
 0x133   :  { %v182_v37 = vadd.f32 1e-05, %v177_v36 }
 0x135   :  { %282 = vrsqrt.f32 %v182_v37 }
 0x13f   :  { %v283_v38 = vpop.eup %282 }
 0x140   :  { %v184_v40 = vmul.f32 %v283_v38, %v180_v33  ;;  %v185_v41 = vmul.f32 %v283_v38, %v181_v34 }
 0x142   :  { %v190_v43 = vmul.f32 %v233_v39, %v184_v40  ;;  %v191_v44 = vmul.f32 %v233_v39, %v185_v41 }
 0x144   :  { %v196_v45 = vadd.f32 %v234_v42, %v190_v43  ;;  %v197_v46 = vadd.f32 %v234_v42, %v191_v44 }
 0x146   :  { %vm198_vm1 = vcmp.gt.f32.partialorder %v196_v45, 0.0  ;;  %vm199_vm2 = vcmp.gt.f32.partialorder %v197_v46, 0.0  ;;  %v200_v47 = vmul.f32 0.01, %v196_v45  ;;  %v201_v48 = vmul.f32 0.01, %v197_v46 }
 0x148   :  { %v202_v49 = vsel %vm198_vm1, %v196_v45, %v200_v47  ;;  %v203_v50 = vsel %vm199_vm2, %v197_v46, %v201_v48 }
 0x149   :  { %204 = vst [vmem:[#allocation7] sm:$0xff] %v202_v49  ;;  %205 = vst [vmem:[#allocation7 + $0x8] sm:$0xff] %v203_v50 }
 0x14a   :  { %339 = shalt.err (!%p336_p6)
}
 0x14b   :  { %s340_s17 = scalar_lea.hbm %s430_s3, 256 }
 0x14c   :  { %p341_p7 = scmp.ne.s32.totalorder %s430_s3, %s340_s17  ;;  %p344_p8 = scmp.lt.u32.totalorder %s340_s17, %s430_s3 }
 0x14e   :  { %p346_p9 = pnand %p344_p8, %p341_p7 }
 0x150   :  { %349 = shalt.err (!%p346_p9)
}
 0x151   :  { %s363_s22 = smov 128   ;;  %s364_s23 = smov 8  }
 0x152   :  { %217 = dma.vmem_to_hbm [thread:$0]  %s212_s14, 256, %s430_s3, [#allocation4], %s363_s22, %s363_s22, %s364_s23  }
 0x153   :  { %354 = dma.done.wait [#allocation4], 256  }
 0x154   :  { %355 = vsyncadd [#allocation4], 4294967040 }
 0x155   :  { %221 = vsyncpa [#allocation3], 1 }
 0x156   :  { %222 = vsyncpa [#allocation6], 1 }
 0x157   :  { %223 = vsyncpa [#allocation4], 1 }

</bundles_post_ra>
